<compile_context>
chip_gen: v5e
topology: v5e:2x2
jax: 0.10.0
libtpu: 0.0.40
codegen_flags: <defaults>
</compile_context>

<pallas_src>
import jax
import jax.numpy as jnp
from jax.experimental import pallas as pl
from jax.experimental.pallas import tpu as pltpu


_NEG_BIG = -1e30  # finite "minus infinity" for masking (exp underflows to exactly 0)


def _class_pool_kernel(x_ref, p_ref, proto_ref):
    """Per-batch class prototypes. x: (1, C, N), p: (1, K, N) -> protos (1, K, C)."""
    feats = x_ref[0].astype(jnp.float32)                       # (C, N)
    preds = p_ref[0].astype(jnp.float32)                       # (K, N)
    k, n = preds.shape

    # argmax over classes (first index on ties, same rule as jnp.argmax).
    cls_iota = jax.lax.broadcasted_iota(jnp.int32, (k, n), 0)
    pix_max = jnp.max(preds, axis=0, keepdims=True)            # (1, N)
    first_idx = jnp.min(jnp.where(preds >= pix_max, cls_iota, k),
                        axis=0, keepdims=True)                 # (1, N)
    onehot = cls_iota == first_idx                             # (K, N) bool

    # masked softmax over pixels of each class.  Mask BEFORE the exp so pixels belonging
    # to other classes can never overflow (exp(-1e30 - m) == 0); empty classes -> zeros.
    neg = jnp.float32(_NEG_BIG)
    masked = jnp.where(onehot, preds, neg)                     # (K, N)
    cls_max = jnp.max(masked, axis=1, keepdims=True)           # (K, 1)
    cls_max = jnp.where(cls_max > neg * 0.5, cls_max, jnp.float32(0.0))
    num = jnp.exp(masked - cls_max)                            # (K, N), exact zeros off-class
    den = jnp.sum(num, axis=1, keepdims=True)                  # (K, 1)
    den = jnp.where(den > 0.0, den, jnp.float32(1.0))
    wsm = num * pl.reciprocal(den, approx=True)                # (K, N)

    # prototypes: protos[k, c] = sum_n wsm[k, n] * feats[c, n]
    protos = jax.lax.dot_general(wsm, feats, (((1,), (1,)), ((), ())),
                                 preferred_element_type=jnp.float32)       # (K, C)
    proto_ref[0] = protos.astype(proto_ref.dtype)


def _attention_kernel(x_ref, p_ref, kproto_ref, vproto_ref,
                      wq_ref, bq_ref, wot_ref, bo_ref,
                      out_ref, m_sc, l_sc, acc_sc, q_sc):
    """Flash-style SelfAttentionBlock. Grid = (B, q_tiles, kv_tiles)."""
    ki = pl.program_id(2)

    @pl.when(ki == 0)
    def _init():
        m_sc[...] = jnp.full_like(m_sc, -jnp.inf)
        l_sc[...] = jnp.zeros_like(l_sc)
        acc_sc[...] = jnp.zeros_like(acc_sc)
        # query projection (wq already folded: wq1 @ wq2 * rsqrt(T), bias likewise)
        feats = x_ref[0].astype(jnp.float32)                   # (C, TQ)
        q_sc[...] = jax.lax.dot_general(
            feats, wq_ref[...], (((0,), (0,)), ((), ())),
            preferred_element_type=jnp.float32) + bq_ref[...]  # (TQ, T)

    # one-hot class assignment for this kv tile (recomputed per tile, tiny: (K, TKV)).
    preds = p_ref[0].astype(jnp.float32)                       # (K, TKV)
    k, tkv = preds.shape
    cls_iota = jax.lax.broadcasted_iota(jnp.int32, (k, tkv), 0)
    pix_max = jnp.max(preds, axis=0, keepdims=True)
    first_idx = jnp.min(jnp.where(preds >= pix_max, cls_iota, k),
                        axis=0, keepdims=True)
    onehot = (cls_iota == first_idx).astype(jnp.float32)       # (K, TKV)

    # key/value for this kv tile from the bias-folded prototype projections.
    key = jnp.dot(kproto_ref[0], onehot,
                  preferred_element_type=jnp.float32)          # (T, TKV)
    val = jax.lax.dot_general(onehot, vproto_ref[0], (((0,), (0,)), ((), ())),
                              preferred_element_type=jnp.float32)  # (TKV, T)

    q = q_sc[...]                                              # (TQ, T), pre-scaled
    sim = jnp.dot(q.astype(jnp.bfloat16), key.astype(jnp.bfloat16),
                  preferred_element_type=jnp.float32)          # (TQ, TKV)

    # online softmax update.
    m_prev = m_sc[...]
    m_new = jnp.maximum(m_prev, jnp.max(sim, axis=1, keepdims=True))
    alpha = jnp.exp(m_prev - m_new)
    p = jnp.exp(sim - m_new)
    l_sc[...] = alpha * l_sc[...] + jnp.sum(p, axis=1, keepdims=True)
    acc_sc[...] = alpha * acc_sc[...] + jnp.dot(
        p.astype(jnp.bfloat16), val.astype(jnp.bfloat16),
        preferred_element_type=jnp.float32)                    # (TQ, T)
    m_sc[...] = m_new

    @pl.when(ki == pl.num_programs(2) - 1)
    def _finalize():
        ctx = acc_sc[...] * pl.reciprocal(l_sc[...], approx=True)            # (TQ, T)
        out = jax.lax.dot_general(wot_ref[...], ctx, (((1,), (1,)), ((), ())),
                                  preferred_element_type=jnp.float32)        # (C, TQ)
        out_ref[0] = (out + bo_ref[...]).astype(out_ref.dtype)


def init_params(key, feats_channels, transform_channels):
    C, T = feats_channels, transform_channels
    ks = jax.random.split(key, 12)
    s = lambda fan_in: 1.0 / jnp.sqrt(jnp.float32(fan_in))
    return {
        "wq1": jax.random.normal(ks[0], (C, T), jnp.float32) * s(C),
        "bq1": jax.random.normal(ks[1], (1, T), jnp.float32) * 0.01,
        "wq2": jax.random.normal(ks[2], (T, T), jnp.float32) * s(T),
        "bq2": jax.random.normal(ks[3], (1, T), jnp.float32) * 0.01,
        "wk1": jax.random.normal(ks[4], (C, T), jnp.float32) * s(C),
        "bk1": jax.random.normal(ks[5], (1, T), jnp.float32) * 0.01,
        "wk2": jax.random.normal(ks[6], (T, T), jnp.float32) * s(T),
        "bk2": jax.random.normal(ks[7], (1, T), jnp.float32) * 0.01,
        "wv": jax.random.normal(ks[8], (C, T), jnp.float32) * s(C),
        "bv": jax.random.normal(ks[9], (1, T), jnp.float32) * 0.01,
        "wo": jax.random.normal(ks[10], (T, C), jnp.float32) * s(T),
        "bo": jax.random.normal(ks[11], (1, C), jnp.float32) * 0.01,
    }


def _pick_tile(n):
    # Modest tiles that fit comfortably in VMEM on v5e/v6e (128 MiB) and v7x (64 MiB/TC).
    for t in (512, 256, 128):
        if n % t == 0:
            return t
    return n


def semantic_level_context(x, preds, feats_il, params, *,
                           q_tile=None, kv_tile=None, concat_input=False):
    """x: (B, C, H, W), preds: (B, K, H, W). Returns (B, C, H, W)."""
    if concat_input:
        # TODO(synk): concat_input=True bottleneck (3x3 conv on cat[feats_il, out]) is not
        # instantiated by the module defaults and is not implemented here.
        raise NotImplementedError("concat_input=True bottleneck not implemented")
    del feats_il

    B, C, H, W = x.shape
    K = preds.shape[1]
    T = params["wq2"].shape[0]
    N = H * W

    # channel-major: NCHW -> (B, C, N) is a pure reshape (no transpose).
    xf = x.reshape(B, C, N).astype(jnp.float32)
    pf = preds.reshape(B, K, N).astype(jnp.float32)

    # ---- pass 1: per-batch class prototypes (K, C) --------------------------------
    # TODO(synk): pooling keeps full N per batch in VMEM; tile over N (online softmax)
    # for very large resolutions.
    protos = pl.pallas_call(
        _class_pool_kernel,
        out_shape=jax.ShapeDtypeStruct((B, K, C), jnp.float32),
        grid_spec=pltpu.PrefetchScalarGridSpec(
            num_scalar_prefetch=0,
            grid=(B,),
            in_specs=[pl.BlockSpec((1, C, N), lambda b: (b, 0, 0)),
                      pl.BlockSpec((1, K, N), lambda b: (b, 0, 0))],
            out_specs=pl.BlockSpec((1, K, C), lambda b: (b, 0, 0)),
        ),
        compiler_params=pltpu.CompilerParams(dimension_semantics=("parallel",)),
    )(xf, pf)

    # ---- wrapper-level algebraic folds (zero runtime cost) ------------------------
    inv_sqrt_t = 1.0 / jnp.sqrt(jnp.float32(T))
    wq = (params["wq1"] @ params["wq2"]) * inv_sqrt_t                       # (C, T)
    bq = (params["bq1"] @ params["wq2"] + params["bq2"]) * inv_sqrt_t       # (1, T)
    wk = params["wk1"] @ params["wk2"]                                      # (C, T)
    bk = params["bk1"] @ params["wk2"] + params["bk2"]                      # (1, T)

    # feats_sl = onehot @ protos and onehot rows sum to 1, so key/value can be built
    # from bias-folded prototype projections (K rows instead of N rows).
    k_protos = jnp.swapaxes(jnp.einsum("bkc,ct->bkt", protos, wk) + bk, 1, 2)   # (B, T, K)
    v_protos = jnp.einsum("bkc,ct->bkt", protos, params["wv"]) + params["bv"]   # (B, K, T)
    wo_t = jnp.transpose(params["wo"])                                          # (C, T)
    bo_c = jnp.transpose(params["bo"])                                          # (C, 1)

    if q_tile is None:
        q_tile = _pick_tile(N)
    if kv_tile is None:
        kv_tile = _pick_tile(N)
    assert N % q_tile == 0 and N % kv_tile == 0, (N, q_tile, kv_tile)
    nq, nk = N // q_tile, N // kv_tile

    out = pl.pallas_call(
        _attention_kernel,
        out_shape=jax.ShapeDtypeStruct((B, C, N), jnp.float32),
        grid_spec=pltpu.PrefetchScalarGridSpec(
            num_scalar_prefetch=0,
            grid=(B, nq, nk),
            in_specs=[
                pl.BlockSpec((1, C, q_tile), lambda b, qi, ki: (b, 0, qi)),
                pl.BlockSpec((1, K, kv_tile), lambda b, qi, ki: (b, 0, ki)),
                pl.BlockSpec((1, T, K), lambda b, qi, ki: (b, 0, 0)),
                pl.BlockSpec((1, K, T), lambda b, qi, ki: (b, 0, 0)),
                pl.BlockSpec((C, T), lambda b, qi, ki: (0, 0)),
                pl.BlockSpec((1, T), lambda b, qi, ki: (0, 0)),
                pl.BlockSpec((C, T), lambda b, qi, ki: (0, 0)),
                pl.BlockSpec((C, 1), lambda b, qi, ki: (0, 0)),
            ],
            out_specs=pl.BlockSpec((1, C, q_tile), lambda b, qi, ki: (b, 0, qi)),
            scratch_shapes=[
                pltpu.VMEM((q_tile, 1), jnp.float32),   # running max m
                pltpu.VMEM((q_tile, 1), jnp.float32),   # running denom l
                pltpu.VMEM((q_tile, T), jnp.float32),   # output accumulator
                pltpu.VMEM((q_tile, T), jnp.float32),   # projected q tile
            ],
        ),
        compiler_params=pltpu.CompilerParams(
            dimension_semantics=("parallel", "parallel", "arbitrary")),
    )(xf, pf, k_protos, v_protos, wq, bq, wo_t, bo_c)

    # channel-major output: (B, C, N) -> NCHW is a pure reshape.
    return out.reshape(B, C, H, W)


def _reference(x, preds, params):
    """Plain-JAX f32 reference with the module's semantics (for correctness check)."""
    B, C, H, W = x.shape
    K = preds.shape[1]
    N = H * W
    xf = jnp.transpose(x, (0, 2, 3, 1)).reshape(B, N, C)
    pf = jnp.transpose(preds, (0, 2, 3, 1)).reshape(B, N, K)

    def one(feats, pr):
        am = jnp.argmax(pr, axis=1)
        onehot = jax.nn.one_hot(am, K, dtype=jnp.float32)
        neg = jnp.float32(_NEG_BIG)
        masked = jnp.where(onehot > 0, pr, neg)
        col_max = jnp.max(masked, axis=0, keepdims=True)
        col_max = jnp.where(col_max > neg * 0.5, col_max, 0.0)
        num = jnp.exp(masked - col_max)          # mask before exp: no inf*0 NaN
        den = jnp.sum(num, axis=0, keepdims=True)
        den = jnp.where(den > 0.0, den, 1.0)
        w = num / den
        protos = w.T @ feats
        feats_sl = onehot @ protos
        q = (feats @ params["wq1"] + params["bq1"]) @ params["wq2"] + params["bq2"]
        k_ = (feats_sl @ params["wk1"] + params["bk1"]) @ params["wk2"] + params["bk2"]
        v = feats_sl @ params["wv"] + params["bv"]
        sim = (q @ k_.T) / jnp.sqrt(jnp.float32(q.shape[1]))
        sim = jax.nn.softmax(sim, axis=-1)
        ctx = sim @ v
        return ctx @ params["wo"] + params["bo"]

    out = jax.vmap(one)(xf, pf)
    return jnp.transpose(out.reshape(B, H, W, C), (0, 3, 1, 2))


if __name__ == "__main__":
    B, C, H, W = 2, 32, 16, 16          # feats_channels = 32, N = 256
    K = 8                                # num_classes
    T = 16                               # transform_channels

    key = jax.random.PRNGKey(0)
    kx, kp, kf, kw = jax.random.split(key, 4)
    x = jax.random.normal(kx, (B, C, H, W), jnp.float32)
    preds = jax.random.normal(kp, (B, K, H, W), jnp.float32)
    feats_il = jax.random.normal(kf, (B, C, H, W), jnp.float32)
    params = init_params(kw, feats_channels=C, transform_channels=T)

    # 128-pixel tiles -> 2x2 q/kv tiles per image: exercises the flash pipeline.
    out = semantic_level_context(x, preds, feats_il, params, q_tile=128, kv_tile=128)
    out = jax.block_until_ready(out)

    ref = jax.block_until_ready(_reference(x, preds, params))
    assert out.shape == (B, C, H, W)
    # tolerance accounts for bf16 MXU operands + approx reciprocals vs all-f32 reference
    assert jnp.allclose(out, ref, rtol=2e-2, atol=2e-2), float(jnp.max(jnp.abs(out - ref)))

    print("KERNEL_OK")
</pallas_src>

<mosaic_0001>
module attributes {stable_mosaic.version = 11 : i64} {
  func.func @_class_pool_kernel(%arg0: i32, %arg1: memref<1x32x256xf32, #tpu.memory_space<vmem>>, %arg2: memref<1x8x256xf32, #tpu.memory_space<vmem>>, %arg3: memref<1x8x32xf32, #tpu.memory_space<vmem>>) attributes {dimension_semantics = [#tpu.dimension_semantics<parallel>], iteration_bounds = array<i64: 2>, scalar_prefetch = 0 : i64, scratch_operands = 0 : i64, tpu.core_type = #tpu.core_type<tc>, window_params = [{transform_indices = @transform_0, window_bounds = array<i64: 1, 32, 256>}, {transform_indices = @transform_1, window_bounds = array<i64: 1, 8, 256>}, {transform_indices = @transform_2, window_bounds = array<i64: 1, 8, 32>}]} {
    %c0 = arith.constant 0 : index
    %c0_0 = arith.constant 0 : index
    %c0_1 = arith.constant 0 : index
    %0 = vector.load %arg1[%c0, %c0_0, %c0_1] : memref<1x32x256xf32, #tpu.memory_space<vmem>>, vector<1x32x256xf32>
    %1 = vector.shape_cast %0 : vector<1x32x256xf32> to vector<32x256xf32>
    %c0_2 = arith.constant 0 : index
    %c0_3 = arith.constant 0 : index
    %c0_4 = arith.constant 0 : index
    %2 = vector.load %arg2[%c0_2, %c0_3, %c0_4] : memref<1x8x256xf32, #tpu.memory_space<vmem>>, vector<1x8x256xf32>
    %3 = vector.shape_cast %2 : vector<1x8x256xf32> to vector<8x256xf32>
    %4 = tpu.iota {dimensions = array<i32: 0>} : vector<8x256xi32>
    %cst = arith.constant dense<0xFF800000> : vector<256xf32>
    %5 = vector.multi_reduction <maximumf>, %3, %cst [0] : vector<8x256xf32> to vector<256xf32>
    %6 = vector.shape_cast %5 : vector<256xf32> to vector<1x256xf32>
    %7 = vector.broadcast %6 : vector<1x256xf32> to vector<8x256xf32>
    %8 = arith.cmpf oge, %3, %7 : vector<8x256xf32>
    %c8_i32 = arith.constant 8 : i32
    %9 = vector.broadcast %c8_i32 : i32 to vector<8x256xi32>
    %10 = arith.select %8, %4, %9 : vector<8x256xi1>, vector<8x256xi32>
    %cst_5 = arith.constant dense<2147483647> : vector<256xi32>
    %11 = vector.multi_reduction <minsi>, %10, %cst_5 [0] : vector<8x256xi32> to vector<256xi32>
    %12 = vector.shape_cast %11 : vector<256xi32> to vector<1x256xi32>
    %13 = vector.broadcast %12 : vector<1x256xi32> to vector<8x256xi32>
    %14 = arith.cmpi eq, %4, %13 : vector<8x256xi32>
    %cst_6 = arith.constant -1.000000e+30 : f32
    %15 = vector.broadcast %cst_6 : f32 to vector<8x256xf32>
    %16 = arith.select %14, %3, %15 : vector<8x256xi1>, vector<8x256xf32>
    %cst_7 = arith.constant dense<0xFF800000> : vector<8xf32>
    %17 = vector.multi_reduction <maximumf>, %16, %cst_7 [1] : vector<8x256xf32> to vector<8xf32>
    %18 = vector.shape_cast %17 : vector<8xf32> to vector<8x1xf32>
    %cst_8 = arith.constant -1.000000e+30 : f32
    %cst_9 = arith.constant 5.000000e-01 : f32
    %19 = arith.mulf %cst_8, %cst_9 : f32
    %20 = vector.broadcast %19 : f32 to vector<8x1xf32>
    %21 = arith.cmpf ogt, %18, %20 : vector<8x1xf32>
    %cst_10 = arith.constant 0.000000e+00 : f32
    %22 = vector.broadcast %cst_10 : f32 to vector<8x1xf32>
    %23 = arith.select %21, %18, %22 : vector<8x1xi1>, vector<8x1xf32>
    %24 = vector.broadcast %23 : vector<8x1xf32> to vector<8x256xf32>
    %25 = arith.subf %16, %24 : vector<8x256xf32>
    %26 = math.exp %25 : vector<8x256xf32>
    %cst_11 = arith.constant dense<0.000000e+00> : vector<8xf32>
    %27 = vector.multi_reduction <add>, %26, %cst_11 [1] : vector<8x256xf32> to vector<8xf32>
    %28 = vector.shape_cast %27 : vector<8xf32> to vector<8x1xf32>
    %cst_12 = arith.constant 0.000000e+00 : f32
    %29 = vector.broadcast %cst_12 : f32 to vector<8x1xf32>
    %30 = arith.cmpf ogt, %28, %29 : vector<8x1xf32>
    %cst_13 = arith.constant 1.000000e+00 : f32
    %31 = vector.broadcast %cst_13 : f32 to vector<8x1xf32>
    %32 = arith.select %30, %28, %31 : vector<8x1xi1>, vector<8x1xf32>
    %33 = tpu.reciprocal %32 {approx = true} : vector<8x1xf32> -> vector<8x1xf32>
    %34 = vector.broadcast %33 : vector<8x1xf32> to vector<8x256xf32>
    %35 = arith.mulf %26, %34 : vector<8x256xf32>
    %cst_14 = arith.constant dense<0.000000e+00> : vector<8x32xf32>
    %36 = tpu.matmul %35, %1, %cst_14 {dimension_numbers = #tpu.dot_dimension_numbers<[1], [1], [0], [0], [0, 0, 1, 0], [], []>} : vector<8x256xf32>, vector<32x256xf32>, vector<8x32xf32> -> vector<8x32xf32>
    %c0_15 = arith.constant 0 : index
    %c0_16 = arith.constant 0 : index
    %c0_17 = arith.constant 0 : index
    %37 = vector.load %arg3[%c0_15, %c0_16, %c0_17] : memref<1x8x32xf32, #tpu.memory_space<vmem>>, vector<1x8x32xf32>
    %38 = vector.shape_cast %37 : vector<1x8x32xf32> to vector<8x32xf32>
    %39 = vector.shape_cast %36 : vector<8x32xf32> to vector<1x8x32xf32>
    tpu.vector_store %arg3[%c0_15, %c0_16, %c0_17], %39 {strides = array<i32>} : memref<1x8x32xf32, #tpu.memory_space<vmem>>, vector<1x8x32xf32>,
    return
  }
  func.func @transform_0(%arg0: i32) -> (i32, i32, i32) {
    %c0_i32 = arith.constant 0 : i32
    %c0_i32_0 = arith.constant 0 : i32
    %c0_i32_1 = arith.constant 0 : i32
    return %arg0, %c0_i32, %c0_i32_0 : i32, i32, i32
  }
  func.func @transform_1(%arg0: i32) -> (i32, i32, i32) {
    %c0_i32 = arith.constant 0 : i32
    %c0_i32_0 = arith.constant 0 : i32
    %c0_i32_1 = arith.constant 0 : i32
    return %arg0, %c0_i32, %c0_i32_0 : i32, i32, i32
  }
  func.func @transform_2(%arg0: i32) -> (i32, i32, i32) {
    %c0_i32 = arith.constant 0 : i32
    %c0_i32_0 = arith.constant 0 : i32
    %c0_i32_1 = arith.constant 0 : i32
    return %arg0, %c0_i32, %c0_i32_0 : i32, i32, i32
  }
}

</mosaic_0001>

<bundles_post_ra>
// kernel: tpu_custom_call.1
= control target key start
LH: loop header
LB: loop body
LE: loop exit
PB: predicated region body
PF: predicated region fallthrough
CT: control target
= control target key end

     0   :  { %7 = vsyncpa [#allocation3], 0  ;;  %s825_s0 = inlined_call_operand.hbm [shape: f32[2,32,256], index: 0, kind: input, shape index: {}]   ;;  %s826_s1 = inlined_call_operand.hbm [shape: f32[2,8,256], index: 1, kind: input, shape index: {}]   ;;  %s827_s2 = inlined_call_operand.hbm [shape: f32[2,8,32], index: 2, kind: output, shape index: {}]  }
   0x1   :  { %9 = vsyncpa [#allocation3 + $0x1], 0 }
   0x2   :  { %10 = vsyncpa [#allocation6], 0 }
   0x3   :  { %12 = vsyncpa [#allocation6 + $0x1], 0 }
   0x4   :  { %13 = vsyncpa [#allocation4], 0 }
   0x5   :  { %15 = vsyncpa [#allocation4 + $0x1], 0  ;;  %s651_s9 = smov 0   ;;  %s653_s10 = smov 0  }
   0x6   :  { %s655_s11 = smov 0   ;;  %s657_s12 = smov 0  }
   0x7 LB: > { %s672_s13 = sadd.s32 4294967295, %s632_s12   ;;  %s424_s14 = sadd.s32 4294967294, %s632_s12   ;;  %s632_s12 = sphi %s657_s12, %s838_s12   ;;  %s628_s11 = sphi %s655_s11, %s837_s11   ;;  %s624_s10 = sphi %s653_s10, %s836_s10   ;;  %s620_s9 = sphi %s651_s9, %s835_s9  }
   0x8   : > { %s676_s15 = sadd.s32 1, %s632_s12   ;;  %s28_s16 = sadd.s32 1, %s628_s11 }
   0x9   : > { %s25_s17 = ssub.s32 %s632_s12, %s676_s15  ;;  %p35_p0 = scmp.ne.s32.totalorder %s628_s11, %s624_s10 }
   0xa   : > { %p26_p1 = scmp.eq.s32.totalorder %s25_s17, 0  ;;  %p36_p2 = scmp.eq.s32.totalorder %s632_s12, 0 }
   0xb   : > { %p41_p3 = scmp.ne.s32.totalorder %s624_s10, %s620_s9  ;;  %p42_p4 = scmp.eq.s32.totalorder %s672_s13, 0 }
   0xc   : > { %s688_s18 = scalar_select %p26_p1, %s628_s11, %s28_s16  }
   0xd   : > { %p690_p5 = por %p36_p2, %p35_p0  ;;  %p694_p6 = por %p42_p4, %p41_p3 }
   0xe   : > { %p91_p7 = scmp.eq.s32.totalorder %s672_s13, 1  ;;  %p97_p8 = scmp.eq.s32.totalorder %s424_s14, 1 }
   0xf   : > { %p460_p10 = scmp.lt.s32.totalorder %s632_s12, 2  ;;  %s710_s23 = sand.u32 1, %s628_s11  }
  0x10   : > { %p701_p11 = por %p91_p7, %p35_p0  ;;  %p705_p12 = por %p97_p8, %p41_p3 }
  0x11   : > { %s441_s24 = sshll.u32 %s632_s12, 6  ;;  %s427_s25 = sshll.u32 %s710_s23, 6 }
  0x12   : > { %s126_s28 = scalar_lea.hbm %s825_s0, %s441_s24  ;;  %s121_s30 = scalar_lea.vmem [#allocation2], %s427_s25 }
  0x13   : > { %s127_s29 = sshll.u32 %s126_s28, 4  ;;  %s129_s3 = sshll.u32 %s121_s30, 4  ;;  %s128_s29 = int_to_ptr.hbm [resolvable:$true] %s127_s29  ;;  %s130_s3 = int_to_ptr.vmem [resolvable:$true] %s129_s3 }
  0x14   : > { %p719_p13 = pnand %p460_p10, %p690_p5  ;;  %p433_p0 = scmp.ge.s32.totalorder %s632_s12, 1 }
  0x15   : > { %p157_p1 = scmp.lt.s32.totalorder %s632_s12, 3  ;;  %s118_s5 = scalar_lea.sflag [#allocation3], %s710_s23 }
  0x16   : > { %s502_s6 = sshra.s32 %s128_s29, 4  ;;  %p506_p3 = pneg %p719_p13  ;;  %s503_s6 = int_to_ptr.hbm [resolvable:$true] %s502_s6 }
  0x17   : > { %s504_s7 = scalar_lea.hbm %s503_s6, 64  ;;  %s509_s16 = scalar_lea.hbm %s825_s0, 128 }
  0x18   : > { %p505_p2 = scmp.ne.s32.totalorder %s503_s6, %s504_s7  ;;  %p510_p5 = scmp.lt.s32.totalorder %s503_s6, %s825_s0 }
  0x19   : > { %p511_p8 = scmp.lt.s32.totalorder %s509_s16, %s504_s7 }
  0x1a   : > { %p507_p4 = pnand %p506_p3, %p505_p2 }
  0x1b   : > { %p512_p10 = por %p511_p8, %p510_p5 }
  0x1c   : > { %p508_p7 = pneg %p507_p4 }
  0x1e   : > { %p513_p9 = pnand %p512_p10, %p508_p7 }
  0x20   : > { %516 = shalt.err (!%p513_p9)
}
  0x21   : > { %s634_s24 = smov 256   ;;  %s635_s25 = smov 16  }
  0x22   : > { %452 = dma.hbm_to_vmem [thread:$0]  (!%p719_p13), %s128_s29, 1024, %s130_s3, %s118_s5, %s634_s24, %s634_s24, %s635_s25  }
  0x23   : > { %p743_p2 = pnand %p433_p0, %p157_p1  ;;  %s430_s27 = sshll.u32 %s710_s23, 4 }
  0x24   : > { %s442_s28 = sshll.u32 %s632_s12, 4  ;;  %s143_s14 = scalar_lea.vmem [#allocation5], %s430_s27 }
  0x25   : > { %s148_s7 = scalar_lea.hbm %s826_s1, %s442_s28  ;;  %s152_s16 = sshll.u32 %s143_s14, 4  ;;  %s153_s16 = int_to_ptr.vmem [resolvable:$true] %s152_s16 }
  0x26   : > { %s150_s8 = sshll.u32 %s148_s7, 4  ;;  %s140_s17 = scalar_lea.sflag [#allocation6], %s710_s23  ;;  %s151_s8 = int_to_ptr.hbm [resolvable:$true] %s150_s8 }
  0x27   : > { %s532_s19 = sshra.s32 %s151_s8, 4  ;;  %s539_s24 = scalar_lea.hbm %s826_s1, 32  ;;  %s533_s19 = int_to_ptr.hbm [resolvable:$true] %s532_s19 }
  0x28   : > { %s534_s29 = scalar_lea.hbm %s533_s19, 16  ;;  %p540_p4 = scmp.lt.s32.totalorder %s533_s19, %s826_s1 }
  0x29   : > { %p535_p9 = scmp.ne.s32.totalorder %s533_s19, %s534_s29  ;;  %p541_p7 = scmp.lt.s32.totalorder %s539_s24, %s534_s29 }
  0x2b   : > { %p537_p0 = pnand %p535_p9, %p506_p3  ;;  %p542_p5 = por %p541_p7, %p540_p4 }
  0x2d   : > { %p538_p1 = pneg %p537_p0 }
  0x2f   : > { %p543_p8 = pnand %p542_p5, %p538_p1 }
  0x31   : > { %546 = shalt.err (!%p543_p8)
}
  0x32   : > { %455 = dma.hbm_to_vmem [thread:$0]  (!%p719_p13), %s151_s8, 256, %s153_s16, %s140_s17  }
  0x33   : > { %161 = sbr.rel (%p743_p2) target bundleno = 481 (0x1e1), region = 28  ;;  %s767_s23 = sand.u32 (!%p743_p2), 1, %s624_s10  }
  0x34   : > { %s434_s27 = sshll.u32 (!%p743_p2), %s767_s23, 6  ;;  %s164_s30 = scalar_lea.sflag (!%p743_p2), [#allocation3], %s767_s23 }
  0x35   : > { %s771_s6 = scalar_lea.vmem (!%p743_p2), [#allocation2], %s434_s27 }
  0x38   : > { %607 = dma.done.wait (%p694_p6), %s164_s30, 1024  }
  0x39   : > { %609 = vsyncadd (%p694_p6), %s164_s30, 4294966272  ;;  %s435_s4 = sshll.u32 %s767_s23, 4  ;;  %s174_s26 = scalar_lea.sflag [#allocation6], %s767_s23 }
  0x3a   : > { %s177_s7 = scalar_lea.vmem [#allocation5], %s435_s4 }
  0x3b   : > { %611 = dma.done.wait (%p694_p6), %s174_s26, 256  }
  0x3c   : > { %613 = vsyncadd (%p694_p6), %s174_s26, 4294967040  ;;  %v212_v0 = vld [vmem:[%s177_s7] sm:$0xff]  ;;  %v213_v1 = vld [vmem:[%s177_s7 + $0x8] sm:$0xff]  ;;  %v214_v8 = vlaneseq  ;;  %s436_s20 = sshll.u32 %s767_s23, 3  ;;  %s438_s8 = sshll.u32 %s672_s13, 3  ;;  %vm313_vm12 = vcmask 261120  }
  0x3d   : > { %v216_v2 = vrot.slane %v212_v0, 4  ;;  %v222_v3 = vrot.slane %v213_v1, 4  ;;  %v210_v33 = vld [vmem:[%s771_s6 + $0x30] sm:$0xff]  ;;  %v211_v34 = vld [vmem:[%s771_s6 + $0x38] sm:$0xff]  ;;  %v208_v44 = vld [vmem:[%s771_s6 + $0x20] sm:$0xff]  ;;  %s326_s17 = scalar_lea.hbm %s827_s2, %s438_s8  ;;  %s203_s19 = scalar_lea.vmem [#allocation7], %s436_s20 }
  0x3e   : > { %v215_v13 = vshrl.u32 %v214_v8, 7  ;;  %285 = vmatpush.xpose.msra.mxu0 %v210_v33  ;;  %305 = vmatpush.xpose.msra.mxu1 %v211_v34  ;;  %v209_v45 = vld [vmem:[%s771_s6 + $0x28] sm:$0xff]  ;;  %v206_v46 = vld [vmem:[%s771_s6 + $0x10] sm:$0xff]  ;;  %v207_v47 = vld [vmem:[%s771_s6 + $0x18] sm:$0xff]  ;;  %s328_s29 = sshll.u32 %s203_s19, 4  ;;  %s330_s3 = sshll.u32 %s326_s17, 4  ;;  %s329_s29 = int_to_ptr.vmem [resolvable:$true] %s328_s29  ;;  %s331_s3 = int_to_ptr.hbm [resolvable:$true] %s330_s3 }
  0x3f   : > { %v217_v4 = vmax.f32 %v212_v0, %v216_v2  ;;  %v223_v5 = vmax.f32 %v213_v1, %v222_v3  ;;  %v204_v48 = vld [vmem:[%s771_s6] sm:$0xff]  ;;  %v205_v49 = vld [vmem:[%s771_s6 + $0x8] sm:$0xff]  ;;  %s316_s5 = scalar_lea.sflag [#allocation4], %s767_s23  ;;  %s576_s24 = sshra.s32 %s331_s3, 4  ;;  %s577_s24 = int_to_ptr.hbm [resolvable:$true] %s576_s24 }
  0x40   : > { %s578_s25 = scalar_lea.hbm %s577_s24, 8  ;;  %s582_s27 = scalar_lea.hbm %s827_s2, 16 }
  0x41   : > { %v218_v6 = vrot.slane %v217_v4, 2  ;;  %v224_v7 = vrot.slane %v223_v5, 2  ;;  %p579_p6 = scmp.ne.s32.totalorder %s577_s24, %s578_s25  ;;  %p583_p10 = scmp.lt.s32.totalorder %s577_s24, %s827_s2 }
  0x42   : > { %286 = vmatpush.xpose.msra.mxu0 %v208_v44  ;;  %306 = vmatpush.xpose.msra.mxu1 %v209_v45  ;;  %p584_p2 = scmp.lt.s32.totalorder %s582_s27, %s578_s25 }
  0x43   : > { %v219_v9 = vmax.f32 %v217_v4, %v218_v6  ;;  %v225_v10 = vmax.f32 %v223_v5, %v224_v7  ;;  %p580_p13 = pnand %p579_p6, %p701_p11 }
  0x44   : > { %p585_p9 = por %p584_p2, %p583_p10 }
  0x45   : > { %v220_v11 = vrot.slane %v219_v9, 1  ;;  %v226_v12 = vrot.slane %v225_v10, 1  ;;  %p581_p3 = pneg %p580_p13 }
  0x46   : > { %287 = vmatpush.xpose.msra.mxu0 %v206_v46  ;;  %307 = vmatpush.xpose.msra.mxu1 %v207_v47 }
  0x47   : > { %v221_v14 = vmax.f32 %v219_v9, %v220_v11  ;;  %v227_v15 = vmax.f32 %v225_v10, %v226_v12  ;;  %p586_p0 = pnand %p585_p9, %p581_p3 }
  0x49   : > { %vm228_vm0 = vcmp.ge.f32.partialorder %v212_v0, %v221_v14  ;;  %vm229_vm1 = vcmp.ge.f32.partialorder %v213_v1, %v227_v15 }
  0x4a   : > { %v230_v16 = vsel %vm228_vm0, %v215_v13, 8  ;;  %v231_v17 = vsel %vm229_vm1, %v215_v13, 8  ;;  %288 = vmatpush.xpose.msra.mxu0 %v204_v48  ;;  %308 = vmatpush.xpose.msra.mxu1 %v205_v49 }
  0x4b   : > { %v232_v18 = vrot.slane %v230_v16, 4  ;;  %v241_v19 = vrot.slane %v231_v17, 4 }
  0x4d   : > { %vm233_vm2 = vcmp.lt.s32.totalorder %v230_v16, %v232_v18  ;;  %vm242_vm3 = vcmp.lt.s32.totalorder %v231_v17, %v241_v19 }
  0x4e   : > { %v234_v20 = vsel %vm233_vm2, %v230_v16, %v232_v18  ;;  %v243_v21 = vsel %vm242_vm3, %v231_v17, %v241_v19 }
  0x4f   : > { %v235_v22 = vrot.slane %v234_v20, 2  ;;  %v244_v23 = vrot.slane %v243_v21, 2 }
  0x51   : > { %vm236_vm4 = vcmp.lt.s32.totalorder %v234_v20, %v235_v22  ;;  %vm245_vm5 = vcmp.lt.s32.totalorder %v243_v21, %v244_v23 }
  0x52   : > { %v237_v24 = vsel %vm236_vm4, %v234_v20, %v235_v22  ;;  %v246_v25 = vsel %vm245_vm5, %v243_v21, %v244_v23 }
  0x53   : > { %v238_v26 = vrot.slane %v237_v24, 1  ;;  %v247_v27 = vrot.slane %v246_v25, 1 }
  0x55   : > { %vm239_vm6 = vcmp.lt.s32.totalorder %v237_v24, %v238_v26  ;;  %vm248_vm7 = vcmp.lt.s32.totalorder %v246_v25, %v247_v27 }
  0x56   : > { %v240_v28 = vsel %vm239_vm6, %v237_v24, %v238_v26  ;;  %v249_v29 = vsel %vm248_vm7, %v246_v25, %v247_v27 }
  0x57   : > { %vm250_vm8 = vcmp.eq.s32.totalorder %v215_v13, %v240_v28  ;;  %vm251_vm9 = vcmp.eq.s32.totalorder %v215_v13, %v249_v29 }
  0x58   : > { %v252_v30 = vsel %vm250_vm8, %v212_v0, -1e+30  ;;  %v253_v31 = vsel %vm251_vm9, %v213_v1, -1e+30 }
  0x59   : > { %v254_v32 = vmax.f32 %v252_v30, %v253_v31 }
  0x5b   : > { %255 = vmax.xlane.f32.xlu0 %v254_v32 }
  0xce   : > { %v256_v35 = vpop.xlane.xlu0 %255 }
  0xcf   : > { %vm257_vm10 = vcmp.gt.f32.partialorder %v256_v35, -5e+29 }
  0xd0   : > { %v258_v36 = vsel %vm257_vm10, %v256_v35, 0.0 }
  0xd1   : > { %v259_v37 = vsub.f32 %v252_v30, %v258_v36  ;;  %v260_v38 = vsub.f32 %v253_v31, %v258_v36 }
  0xd3   : > { %v261_v39 = vmul.f32 1.442695, %v259_v37  ;;  %v263_v40 = vmul.f32 1.442695, %v260_v38 }
  0xd5   : > { %496 = vpow2.f32 %v261_v39 }
  0xd6   : > { %498 = vpow2.f32 %v263_v40 }
  0xdb   : > { %v497_v41 = vpop.eup %496 }
  0xdc   : > { %v499_v42 = vpop.eup %498 }
  0xdd   : > { %v265_v43 = vadd.f32 %v499_v42, %v497_v41 }
  0xdf   : > { %266 = vadd.xlane.f32.xlu0 %v265_v43 }
 0x152   : > { %v267_v50 = vpop.xlane.xlu0 %266 }
 0x153   : > { %vm268_vm11 = vcmp.gt.f32.partialorder %v267_v50, 0.0 }
 0x154   : > { %v269_v51 = vsel %vm268_vm11, %v267_v50, 1.0 }
 0x155   : > { %500 = vrcp.f32 %v269_v51 }
 0x15b   : > { %v501_v52 = vpop.eup %500 }
 0x15c   : > { %v271_v53 = vmul.f32 %v501_v52, %v497_v41  ;;  %v272_v54 = vmul.f32 %v501_v52, %v499_v42 }
 0x15e   : > { %289 = vmatmul.f32.vlgmr.msra.gmra.mxu0 %v271_v53  ;;  %309 = vmatmul.f32.vlgmr.msra.gmra.mxu1 %v272_v54 }
 0x1db   : > { %v290_v55 = vpop.f32.mrf.mxu0  ;;  %v310_v56 = vpop.f32.mrf.mxu1 }
 0x1dc   : > { %v311_v57 = vadd.f32 %v310_v56, %v290_v55 }
 0x1de   : > { %314 = vst.msk [vmem:[%s203_s19] sm:$0xff] %vm313_vm12, %v311_v57 }
 0x1df   : > { %589 = shalt.err (!%p586_p0)
}
 0x1e0   : > { %447 = dma.vmem_to_hbm [thread:$0]  (%p701_p11), %s329_s29, 128, %s331_s3, %s316_s5  }
 0x1e1 PF: > { %s342_s23 = sand.u32 1, %s620_s9   ;;  %p834_p1 = scmp.ge.s32.totalorder %s632_s12, 2 }
 0x1e2   : > { %s343_s4 = scalar_lea.sflag [#allocation4], %s342_s23 }
 0x1e3   : > { %p457_p4 = pnand %p834_p1, %p705_p12 }
 0x1e5   : > { %p458_p7 = pneg %p457_p4 }
 0x1e7   : > { %615 = dma.done.wait (%p458_p7), %s343_s4, 128  }
 0x1e8   : > { %617 = vsyncadd (%p458_p7), %s343_s4, 4294967168  ;;  %p18_p5 = scmp.ge.s32.totalorder %s676_s15, 4   ;;  %s835_s9 = smov %s624_s10 }
 0x1e9   : > { %s836_s10 = smov %s628_s11  ;;  %s837_s11 = smov %s688_s18 }
 0x1ea   : > { %s838_s12 = smov %s676_s15  ;;  %20 = sbr.rel (!%p18_p5) target bundleno = 7 (0x7), region = 86 }
 0x1ef   :  { %349 = vsyncpa [#allocation3], 1 }
 0x1f0   :  { %351 = vsyncpa [#allocation3 + $0x1], 1 }
 0x1f1   :  { %352 = vsyncpa [#allocation6], 1 }
 0x1f2   :  { %354 = vsyncpa [#allocation6 + $0x1], 1 }
 0x1f3   :  { %355 = vsyncpa [#allocation4], 1 }
 0x1f4   :  { %357 = vsyncpa [#allocation4 + $0x1], 1 }

</bundles_post_ra>
